<compile_context>
chip_gen: v7x
topology: tpu7x:2x2x1
jax: 0.10.0
libtpu: 0.0.40
codegen_flags: <defaults>
</compile_context>

<pallas_src>
import jax
import jax.numpy as jnp
from jax import lax
from jax.experimental import pallas as pl
from jax.experimental.pallas import tpu as pltpu


def resblock_kernel(x_ref, m1_ref, b1_ref, m2_ref, b2_ref, o_ref,
                    xpad_ref, midpad_ref):
    """Fused ResBlock body for one batch element.

    Layout: each image is (S, L) where S = H/R super-rows and L = R*W*C lanes
    (R consecutive rows folded onto the lane axis so stores are lane-dense).

    x_ref:      (1, S, L)   input super-rows
    m1_ref:     (3, L, L)   conv1 banded weights, one matrix per super-row tap
    b1_ref:     (1, L)      conv1 bias tiled along (R, W)
    m2_ref:     (3, L, L)   conv2 banded weights
    b2_ref:     (1, L)      conv2 bias tiled along (R, W)
    o_ref:      (1, S, L)   output super-rows
    xpad_ref:   (S+2, L)    VMEM scratch: input with zero super-row halo
    midpad_ref: (S+2, L)    VMEM scratch: conv1 activation with zero halo
    """
    S = x_ref.shape[1]
    L = x_ref.shape[2]
    zero_row = jnp.zeros((1, L), jnp.float32)

    # Zero ONLY the halo rows (not the whole scratch). Re-done every grid step
    # because scratch persists per-core and, with a "parallel" batch axis, we
    # cannot rely on program_id == 0 having executed on this core.
    xpad_ref[0:1, :] = zero_row
    xpad_ref[S + 1:S + 2, :] = zero_row
    midpad_ref[0:1, :] = zero_row
    midpad_ref[S + 1:S + 2, :] = zero_row

    # Stage the input super-rows; this also serves as the residual source, so
    # no second full activation is DMA'd from HBM.
    xpad_ref[1:1 + S, :] = x_ref[0]

    # ---- conv1: three banded matmuls, one per super-row tap ----------------
    acc = jnp.dot(xpad_ref[0:S, :], m1_ref[0],
                  preferred_element_type=jnp.float32)
    acc += jnp.dot(xpad_ref[1:1 + S, :], m1_ref[1],
                   preferred_element_type=jnp.float32)
    acc += jnp.dot(xpad_ref[2:2 + S, :], m1_ref[2],
                   preferred_element_type=jnp.float32)
    acc += b1_ref[...]

    # ---- LeakyReLU (PyTorch default negative_slope = 0.01) -----------------
    acc = jnp.where(acc > 0, acc, 0.01 * acc)

    midpad_ref[1:1 + S, :] = acc

    # ---- conv2 + bias + residual (residual from the staged input) ----------
    out = xpad_ref[1:1 + S, :] + b2_ref[...]
    out += jnp.dot(midpad_ref[0:S, :], m2_ref[0],
                   preferred_element_type=jnp.float32)
    out += jnp.dot(midpad_ref[1:1 + S, :], m2_ref[1],
                   preferred_element_type=jnp.float32)
    out += jnp.dot(midpad_ref[2:2 + S, :], m2_ref[2],
                   preferred_element_type=jnp.float32)

    o_ref[0] = out.astype(o_ref.dtype)


def _pick_row_fold(H, WC, target=128):
    """Power-of-two R dividing H; fold rows until the lane width hits target."""
    R = 1
    while (R * WC < target) and (H % (2 * R) == 0):
        R *= 2
    return R


def _banded_weights(w_oihw, W, R):
    """(Cout, Cin, 3, 3) -> (3, R*W*Cin, R*W*Cout) banded matrices.

    mats[ds+1][r_in*W*Cin + w_in*Cin + ci, r_out*W*Cout + w_out*Cout + co]
        = w_oihw[co, ci, dy, dx]
    where the input pixel feeding output (r_out, w_out) under taps (dy, dx)
    lives in super-row offset ds = (r_out + dy - 1) // R at packed row r_in
    and column w_in = w_out + dx - 1.  Taps whose w_in falls outside [0, W)
    are simply absent, which implements the zero padding along W; the zero
    padding along H comes from the zero super-row halo the kernel keeps.
    """
    Cout, Cin, _, _ = w_oihw.shape
    wt = jnp.transpose(w_oihw, (2, 3, 1, 0)).astype(jnp.float32)  # (dy,dx,Ci,Co)
    Lin, Lout = R * W * Cin, R * W * Cout
    mats = [jnp.zeros((Lin, Lout), jnp.float32) for _ in range(3)]
    for dy in range(3):
        for r_out in range(R):
            h_rel = r_out + dy - 1
            ds = h_rel // R              # super-row tap in {-1, 0, +1}
            r_in = h_rel - ds * R        # packed-row index inside that tap
            for dx in range(3):
                shift = jnp.eye(W, k=1 - dx, dtype=jnp.float32)  # [w_in, w_out]
                blk = jnp.kron(shift, wt[dy, dx])                # (W*Ci, W*Co)
                mats[ds + 1] = mats[ds + 1].at[
                    r_in * W * Cin:(r_in + 1) * W * Cin,
                    r_out * W * Cout:(r_out + 1) * W * Cout].add(blk)
    return jnp.stack(mats)


@jax.jit
def resblock_forward(x_nchw, w1, b1, w2, b2):
    """x_nchw: (B, C, H, W); w*: (C, C, 3, 3); b*: (C,). Returns NCHW float32."""
    B, C, H, W = x_nchw.shape
    WC = W * C
    R = _pick_row_fold(H, WC)           # rows folded onto the lane axis
    S = H // R                          # super-rows per image
    L = R * WC                          # lane width (>= 128 when possible)

    # NCHW -> (B, S, L): (r, w, c) folded onto the lane axis, r slowest.
    x_flat = jnp.transpose(x_nchw, (0, 2, 3, 1)).astype(jnp.float32)
    x_flat = x_flat.reshape(B, S, L)

    # One-time weight preprocessing (precomputed once in a real model).
    m1 = _banded_weights(w1, W, R)                           # (3, L, L)
    m2 = _banded_weights(w2, W, R)
    b1row = jnp.tile(b1.astype(jnp.float32), R * W).reshape(1, L)
    b2row = jnp.tile(b2.astype(jnp.float32), R * W).reshape(1, L)

    out_flat = pl.pallas_call(
        resblock_kernel,
        out_shape=jax.ShapeDtypeStruct((B, S, L), jnp.float32),
        grid_spec=pltpu.PrefetchScalarGridSpec(
            num_scalar_prefetch=0,
            grid=(B,),
            in_specs=[
                pl.BlockSpec((1, S, L), lambda b: (b, 0, 0)),   # x super-rows
                pl.BlockSpec((3, L, L), lambda b: (0, 0, 0)),   # conv1 weights
                pl.BlockSpec((1, L), lambda b: (0, 0)),         # conv1 bias
                pl.BlockSpec((3, L, L), lambda b: (0, 0, 0)),   # conv2 weights
                pl.BlockSpec((1, L), lambda b: (0, 0)),         # conv2 bias
            ],
            out_specs=pl.BlockSpec((1, S, L), lambda b: (b, 0, 0)),
            scratch_shapes=[
                pltpu.VMEM((S + 2, L), jnp.float32),  # halo'd input / residual
                pltpu.VMEM((S + 2, L), jnp.float32),  # halo'd conv1 activation
            ],
        ),
        compiler_params=pltpu.CompilerParams(
            dimension_semantics=("parallel",),         # megacore split on v7x
            vmem_limit_bytes=32 * 1024 * 1024,         # safe on v5e/v6e/v7x
        ),
    )(x_flat, m1, b1row, m2, b2row)

    out = out_flat.reshape(B, H, W, C)
    return jnp.transpose(out, (0, 3, 1, 2))


def resblock_reference(x_nchw, w1, b1, w2, b2):
    """Pure-JAX reference (NCHW, matches PyTorch Conv2d/LeakyReLU semantics)."""
    dn = lax.conv_dimension_numbers(x_nchw.shape, w1.shape,
                                    ("NCHW", "OIHW", "NCHW"))
    y = lax.conv_general_dilated(x_nchw, w1, (1, 1), ((1, 1), (1, 1)),
                                 dimension_numbers=dn)
    y = y + b1[None, :, None, None]
    y = jnp.where(y > 0, y, 0.01 * y)
    y = lax.conv_general_dilated(y, w2, (1, 1), ((1, 1), (1, 1)),
                                 dimension_numbers=dn)
    y = y + b2[None, :, None, None]
    return x_nchw + y


if __name__ == "__main__":
    B, C, H, W = 2, 4, 16, 16
    key = jax.random.PRNGKey(0)
    kx, k1, k2, k3, k4 = jax.random.split(key, 5)

    x = jax.random.normal(kx, (B, C, H, W), jnp.float32)
    # Shapes match nn.Conv2d(C, C, kernel_size=3, stride=1, padding=1).
    w1 = 0.1 * jax.random.normal(k1, (C, C, 3, 3), jnp.float32)
    b1 = 0.1 * jax.random.normal(k2, (C,), jnp.float32)
    w2 = 0.1 * jax.random.normal(k3, (C, C, 3, 3), jnp.float32)
    b2 = 0.1 * jax.random.normal(k4, (C,), jnp.float32)

    out = resblock_forward(x, w1, b1, w2, b2)
    jax.block_until_ready(out)

    ref = resblock_reference(x, w1, b1, w2, b2)
    assert out.shape == (B, C, H, W), out.shape
    err = float(jnp.max(jnp.abs(out - ref)))
    assert err < 5e-4, err

    print("KERNEL_OK")
</pallas_src>

<mosaic_0001>
module attributes {stable_mosaic.version = 11 : i64} {
  func.func @resblock_kernel(%arg0: i32, %arg1: memref<1x8x128xf32, #tpu.memory_space<vmem>>, %arg2: memref<3x128x128xf32, #tpu.memory_space<vmem>>, %arg3: memref<1x128xf32, #tpu.memory_space<vmem>>, %arg4: memref<3x128x128xf32, #tpu.memory_space<vmem>>, %arg5: memref<1x128xf32, #tpu.memory_space<vmem>>, %arg6: memref<1x8x128xf32, #tpu.memory_space<vmem>>, %arg7: memref<10x128xf32, #tpu.memory_space<vmem>>, %arg8: memref<10x128xf32, #tpu.memory_space<vmem>>) attributes {dimension_semantics = [#tpu.dimension_semantics<parallel>], iteration_bounds = array<i64: 2>, scalar_prefetch = 0 : i64, scratch_operands = 2 : i64, tpu.core_type = #tpu.core_type<tc>, window_params = [{transform_indices = @transform_0, window_bounds = array<i64: 1, 8, 128>}, {pipeline_mode = #tpu.pipeline_mode<synchronous>, transform_indices = @transform_1, window_bounds = array<i64: 3, 128, 128>}, {pipeline_mode = #tpu.pipeline_mode<synchronous>, transform_indices = @transform_2, window_bounds = array<i64: 1, 128>}, {pipeline_mode = #tpu.pipeline_mode<synchronous>, transform_indices = @transform_3, window_bounds = array<i64: 3, 128, 128>}, {pipeline_mode = #tpu.pipeline_mode<synchronous>, transform_indices = @transform_4, window_bounds = array<i64: 1, 128>}, {transform_indices = @transform_5, window_bounds = array<i64: 1, 8, 128>}]} {
    %cst = arith.constant 0.000000e+00 : f32
    %0 = vector.broadcast %cst : f32 to vector<1x128xf32>
    %c0 = arith.constant 0 : index
    %c0_0 = arith.constant 0 : index
    %1 = vector.load %arg7[%c0, %c0_0] : memref<10x128xf32, #tpu.memory_space<vmem>>, vector<1x128xf32>
    tpu.vector_store %arg7[%c0, %c0_0], %0 {strides = array<i32>} : memref<10x128xf32, #tpu.memory_space<vmem>>, vector<1x128xf32>,
    %c9 = arith.constant 9 : index
    %c0_1 = arith.constant 0 : index
    %2 = vector.load %arg7[%c9, %c0_1] : memref<10x128xf32, #tpu.memory_space<vmem>>, vector<1x128xf32>
    tpu.vector_store %arg7[%c9, %c0_1], %0 {strides = array<i32>} : memref<10x128xf32, #tpu.memory_space<vmem>>, vector<1x128xf32>,
    %c0_2 = arith.constant 0 : index
    %c0_3 = arith.constant 0 : index
    %3 = vector.load %arg8[%c0_2, %c0_3] : memref<10x128xf32, #tpu.memory_space<vmem>>, vector<1x128xf32>
    tpu.vector_store %arg8[%c0_2, %c0_3], %0 {strides = array<i32>} : memref<10x128xf32, #tpu.memory_space<vmem>>, vector<1x128xf32>,
    %c9_4 = arith.constant 9 : index
    %c0_5 = arith.constant 0 : index
    %4 = vector.load %arg8[%c9_4, %c0_5] : memref<10x128xf32, #tpu.memory_space<vmem>>, vector<1x128xf32>
    tpu.vector_store %arg8[%c9_4, %c0_5], %0 {strides = array<i32>} : memref<10x128xf32, #tpu.memory_space<vmem>>, vector<1x128xf32>,
    %c0_6 = arith.constant 0 : index
    %c0_7 = arith.constant 0 : index
    %c0_8 = arith.constant 0 : index
    %5 = vector.load %arg1[%c0_6, %c0_7, %c0_8] : memref<1x8x128xf32, #tpu.memory_space<vmem>>, vector<1x8x128xf32>
    %6 = vector.shape_cast %5 : vector<1x8x128xf32> to vector<8x128xf32>
    %c1 = arith.constant 1 : index
    %c0_9 = arith.constant 0 : index
    %7 = vector.load %arg7[%c1, %c0_9] : memref<10x128xf32, #tpu.memory_space<vmem>>, vector<8x128xf32>
    tpu.vector_store %arg7[%c1, %c0_9], %6 {strides = array<i32>} : memref<10x128xf32, #tpu.memory_space<vmem>>, vector<8x128xf32>,
    %c0_10 = arith.constant 0 : index
    %c0_11 = arith.constant 0 : index
    %8 = vector.load %arg7[%c0_10, %c0_11] : memref<10x128xf32, #tpu.memory_space<vmem>>, vector<8x128xf32>
    %c0_12 = arith.constant 0 : index
    %c0_13 = arith.constant 0 : index
    %c0_14 = arith.constant 0 : index
    %9 = vector.load %arg2[%c0_12, %c0_13, %c0_14] : memref<3x128x128xf32, #tpu.memory_space<vmem>>, vector<1x128x128xf32>
    %10 = vector.shape_cast %9 : vector<1x128x128xf32> to vector<128x128xf32>
    %cst_15 = arith.constant dense<0.000000e+00> : vector<8x128xf32>
    %11 = tpu.matmul %8, %10, %cst_15 {dimension_numbers = #tpu.dot_dimension_numbers<[1], [0], [0], [1], [0, 0, 1, 1], [], []>} : vector<8x128xf32>, vector<128x128xf32>, vector<8x128xf32> -> vector<8x128xf32>
    %c1_16 = arith.constant 1 : index
    %c0_17 = arith.constant 0 : index
    %12 = vector.load %arg7[%c1_16, %c0_17] : memref<10x128xf32, #tpu.memory_space<vmem>>, vector<8x128xf32>
    %c1_18 = arith.constant 1 : index
    %c0_19 = arith.constant 0 : index
    %c0_20 = arith.constant 0 : index
    %13 = vector.load %arg2[%c1_18, %c0_19, %c0_20] : memref<3x128x128xf32, #tpu.memory_space<vmem>>, vector<1x128x128xf32>
    %14 = vector.shape_cast %13 : vector<1x128x128xf32> to vector<128x128xf32>
    %cst_21 = arith.constant dense<0.000000e+00> : vector<8x128xf32>
    %15 = tpu.matmul %12, %14, %cst_21 {dimension_numbers = #tpu.dot_dimension_numbers<[1], [0], [0], [1], [0, 0, 1, 1], [], []>} : vector<8x128xf32>, vector<128x128xf32>, vector<8x128xf32> -> vector<8x128xf32>
    %16 = arith.addf %11, %15 : vector<8x128xf32>
    %c2 = arith.constant 2 : index
    %c0_22 = arith.constant 0 : index
    %17 = vector.load %arg7[%c2, %c0_22] : memref<10x128xf32, #tpu.memory_space<vmem>>, vector<8x128xf32>
    %c2_23 = arith.constant 2 : index
    %c0_24 = arith.constant 0 : index
    %c0_25 = arith.constant 0 : index
    %18 = vector.load %arg2[%c2_23, %c0_24, %c0_25] : memref<3x128x128xf32, #tpu.memory_space<vmem>>, vector<1x128x128xf32>
    %19 = vector.shape_cast %18 : vector<1x128x128xf32> to vector<128x128xf32>
    %cst_26 = arith.constant dense<0.000000e+00> : vector<8x128xf32>
    %20 = tpu.matmul %17, %19, %cst_26 {dimension_numbers = #tpu.dot_dimension_numbers<[1], [0], [0], [1], [0, 0, 1, 1], [], []>} : vector<8x128xf32>, vector<128x128xf32>, vector<8x128xf32> -> vector<8x128xf32>
    %21 = arith.addf %16, %20 : vector<8x128xf32>
    %c0_27 = arith.constant 0 : index
    %c0_28 = arith.constant 0 : index
    %22 = vector.load %arg3[%c0_27, %c0_28] : memref<1x128xf32, #tpu.memory_space<vmem>>, vector<1x128xf32>
    %23 = vector.broadcast %22 : vector<1x128xf32> to vector<8x128xf32>
    %24 = arith.addf %21, %23 : vector<8x128xf32>
    %cst_29 = arith.constant 0.000000e+00 : f32
    %25 = vector.broadcast %cst_29 : f32 to vector<8x128xf32>
    %26 = arith.cmpf ogt, %24, %25 : vector<8x128xf32>
    %cst_30 = arith.constant 0.00999999977 : f32
    %27 = vector.broadcast %cst_30 : f32 to vector<8x128xf32>
    %28 = arith.mulf %27, %24 : vector<8x128xf32>
    %29 = arith.select %26, %24, %28 : vector<8x128xi1>, vector<8x128xf32>
    %c1_31 = arith.constant 1 : index
    %c0_32 = arith.constant 0 : index
    %30 = vector.load %arg8[%c1_31, %c0_32] : memref<10x128xf32, #tpu.memory_space<vmem>>, vector<8x128xf32>
    tpu.vector_store %arg8[%c1_31, %c0_32], %29 {strides = array<i32>} : memref<10x128xf32, #tpu.memory_space<vmem>>, vector<8x128xf32>,
    %c1_33 = arith.constant 1 : index
    %c0_34 = arith.constant 0 : index
    %31 = vector.load %arg7[%c1_33, %c0_34] : memref<10x128xf32, #tpu.memory_space<vmem>>, vector<8x128xf32>
    %c0_35 = arith.constant 0 : index
    %c0_36 = arith.constant 0 : index
    %32 = vector.load %arg5[%c0_35, %c0_36] : memref<1x128xf32, #tpu.memory_space<vmem>>, vector<1x128xf32>
    %33 = vector.broadcast %32 : vector<1x128xf32> to vector<8x128xf32>
    %34 = arith.addf %31, %33 : vector<8x128xf32>
    %c0_37 = arith.constant 0 : index
    %c0_38 = arith.constant 0 : index
    %35 = vector.load %arg8[%c0_37, %c0_38] : memref<10x128xf32, #tpu.memory_space<vmem>>, vector<8x128xf32>
    %c0_39 = arith.constant 0 : index
    %c0_40 = arith.constant 0 : index
    %c0_41 = arith.constant 0 : index
    %36 = vector.load %arg4[%c0_39, %c0_40, %c0_41] : memref<3x128x128xf32, #tpu.memory_space<vmem>>, vector<1x128x128xf32>
    %37 = vector.shape_cast %36 : vector<1x128x128xf32> to vector<128x128xf32>
    %cst_42 = arith.constant dense<0.000000e+00> : vector<8x128xf32>
    %38 = tpu.matmul %35, %37, %cst_42 {dimension_numbers = #tpu.dot_dimension_numbers<[1], [0], [0], [1], [0, 0, 1, 1], [], []>} : vector<8x128xf32>, vector<128x128xf32>, vector<8x128xf32> -> vector<8x128xf32>
    %39 = arith.addf %34, %38 : vector<8x128xf32>
    %c1_43 = arith.constant 1 : index
    %c0_44 = arith.constant 0 : index
    %40 = vector.load %arg8[%c1_43, %c0_44] : memref<10x128xf32, #tpu.memory_space<vmem>>, vector<8x128xf32>
    %c1_45 = arith.constant 1 : index
    %c0_46 = arith.constant 0 : index
    %c0_47 = arith.constant 0 : index
    %41 = vector.load %arg4[%c1_45, %c0_46, %c0_47] : memref<3x128x128xf32, #tpu.memory_space<vmem>>, vector<1x128x128xf32>
    %42 = vector.shape_cast %41 : vector<1x128x128xf32> to vector<128x128xf32>
    %cst_48 = arith.constant dense<0.000000e+00> : vector<8x128xf32>
    %43 = tpu.matmul %40, %42, %cst_48 {dimension_numbers = #tpu.dot_dimension_numbers<[1], [0], [0], [1], [0, 0, 1, 1], [], []>} : vector<8x128xf32>, vector<128x128xf32>, vector<8x128xf32> -> vector<8x128xf32>
    %44 = arith.addf %39, %43 : vector<8x128xf32>
    %c2_49 = arith.constant 2 : index
    %c0_50 = arith.constant 0 : index
    %45 = vector.load %arg8[%c2_49, %c0_50] : memref<10x128xf32, #tpu.memory_space<vmem>>, vector<8x128xf32>
    %c2_51 = arith.constant 2 : index
    %c0_52 = arith.constant 0 : index
    %c0_53 = arith.constant 0 : index
    %46 = vector.load %arg4[%c2_51, %c0_52, %c0_53] : memref<3x128x128xf32, #tpu.memory_space<vmem>>, vector<1x128x128xf32>
    %47 = vector.shape_cast %46 : vector<1x128x128xf32> to vector<128x128xf32>
    %cst_54 = arith.constant dense<0.000000e+00> : vector<8x128xf32>
    %48 = tpu.matmul %45, %47, %cst_54 {dimension_numbers = #tpu.dot_dimension_numbers<[1], [0], [0], [1], [0, 0, 1, 1], [], []>} : vector<8x128xf32>, vector<128x128xf32>, vector<8x128xf32> -> vector<8x128xf32>
    %49 = arith.addf %44, %48 : vector<8x128xf32>
    %c0_55 = arith.constant 0 : index
    %c0_56 = arith.constant 0 : index
    %c0_57 = arith.constant 0 : index
    %50 = vector.load %arg6[%c0_55, %c0_56, %c0_57] : memref<1x8x128xf32, #tpu.memory_space<vmem>>, vector<1x8x128xf32>
    %51 = vector.shape_cast %50 : vector<1x8x128xf32> to vector<8x128xf32>
    %52 = vector.shape_cast %49 : vector<8x128xf32> to vector<1x8x128xf32>
    tpu.vector_store %arg6[%c0_55, %c0_56, %c0_57], %52 {strides = array<i32>} : memref<1x8x128xf32, #tpu.memory_space<vmem>>, vector<1x8x128xf32>,
    return
  }
  func.func @transform_0(%arg0: i32) -> (i32, i32, i32) {
    %c0_i32 = arith.constant 0 : i32
    %c0_i32_0 = arith.constant 0 : i32
    %c0_i32_1 = arith.constant 0 : i32
    return %arg0, %c0_i32, %c0_i32_0 : i32, i32, i32
  }
  func.func @transform_1(%arg0: i32) -> (i32, i32, i32) {
    %c0_i32 = arith.constant 0 : i32
    %c0_i32_0 = arith.constant 0 : i32
    %c0_i32_1 = arith.constant 0 : i32
    %c0_i32_2 = arith.constant 0 : i32
    return %c0_i32, %c0_i32_0, %c0_i32_1 : i32, i32, i32
  }
  func.func @transform_2(%arg0: i32) -> (i32, i32) {
    %c0_i32 = arith.constant 0 : i32
    %c0_i32_0 = arith.constant 0 : i32
    %c0_i32_1 = arith.constant 0 : i32
    return %c0_i32, %c0_i32_0 : i32, i32
  }
  func.func @transform_3(%arg0: i32) -> (i32, i32, i32) {
    %c0_i32 = arith.constant 0 : i32
    %c0_i32_0 = arith.constant 0 : i32
    %c0_i32_1 = arith.constant 0 : i32
    %c0_i32_2 = arith.constant 0 : i32
    return %c0_i32, %c0_i32_0, %c0_i32_1 : i32, i32, i32
  }
  func.func @transform_4(%arg0: i32) -> (i32, i32) {
    %c0_i32 = arith.constant 0 : i32
    %c0_i32_0 = arith.constant 0 : i32
    %c0_i32_1 = arith.constant 0 : i32
    return %c0_i32, %c0_i32_0 : i32, i32
  }
  func.func @transform_5(%arg0: i32) -> (i32, i32, i32) {
    %c0_i32 = arith.constant 0 : i32
    %c0_i32_0 = arith.constant 0 : i32
    %c0_i32_1 = arith.constant 0 : i32
    return %arg0, %c0_i32, %c0_i32_0 : i32, i32, i32
  }
}

</mosaic_0001>

<bundles_post_ra>
// kernel: tile.14
= control target key start
LH: loop header
LB: loop body
LE: loop exit
PB: predicated region body
PF: predicated region fallthrough
CT: control target
= control target key end

     0   :  { %s259_s10 = smov 124   ;;  %s260_s11 = smov 116   ;;  %vm3_vm0 = vcmask 31744   ;;  %vm9_vm1 = vcmask 1048544   ;;  %vm15_vm2 = vcmask 1015744   ;;  %vm21_vm3 = vcmask 982944   ;;  %s399_s0 = inlined_call_operand.vmem [shape: f32[32,4], index: 0, kind: input, shape index: {}]   ;;  %s400_s1 = inlined_call_operand.vmem [shape: f32[1,128], index: 1, kind: output, shape index: {}]  }
   0x1   :  { %v197_v0 = vld [vmem:[%s399_s0 + $0x1f] sm:$0x1]   ;;  %v199_v1 = vld [vmem:[%s399_s0 + $0x1d] sm:$0x1]   ;;  %v198_v2 = vld [vmem:[%s399_s0 + $0x1e] sm:$0x1]  }
   0x2   :  { %7 = vrot.lane.b32.xlu0 %v197_v0, %s259_s10  ;;  %19 = vrot.lane.b32.xlu1 %v199_v1, %s260_s11  ;;  %v200_v3 = vld [vmem:[%s399_s0 + $0x1c] sm:$0x1]   ;;  %s261_s16 = smov 120   ;;  %s262_s17 = smov 112   ;;  %v201_v4 = vld [vmem:[%s399_s0 + $0x1b] sm:$0x1]  }
   0x3   :  { %v202_v5 = vld [vmem:[%s399_s0 + $0x1a] sm:$0x1]   ;;  %s263_s22 = smov 108   ;;  %s264_s23 = smov 104   ;;  %v203_v6 = vld [vmem:[%s399_s0 + $0x19] sm:$0x1]  }
   0x4   :  { %v204_v7 = vld [vmem:[%s399_s0 + $0x18] sm:$0x1]   ;;  %s265_s28 = smov 100   ;;  %s266_s29 = smov 96   ;;  %v205_v8 = vld [vmem:[%s399_s0 + $0x17] sm:$0x1]  }
   0x5   :  { %v206_v9 = vld [vmem:[%s399_s0 + $0x16] sm:$0x1]   ;;  %v2_v10 = vld [vmem:[%s399_s0] sm:$0x1]   ;;  %s267_s7 = smov 92   ;;  %s268_s8 = smov 88  }
   0x6   :  { %13 = vrot.lane.b32.xlu0 %v198_v2, %s261_s16  ;;  %25 = vrot.lane.b32.xlu1 %v200_v3, %s262_s17  ;;  %4 = vst.msk [vmem:[#allocation0] sm:$0x1] %vm3_vm0, %v2_v10   ;;  %v207_v11 = vld [vmem:[%s399_s0 + $0x15] sm:$0x1]   ;;  %v208_v12 = vld [vmem:[%s399_s0 + $0x14] sm:$0x1]  }
   0x7   :  { %s269_s13 = smov 84   ;;  %s270_s14 = smov 80   ;;  %v209_v13 = vld [vmem:[%s399_s0 + $0x13] sm:$0x1]   ;;  %v210_v14 = vld [vmem:[%s399_s0 + $0x12] sm:$0x1]  }
   0x8   :  { %s271_s19 = smov 76   ;;  %s272_s20 = smov 72   ;;  %v211_v15 = vld [vmem:[%s399_s0 + $0x11] sm:$0x1]   ;;  %v212_v16 = vld [vmem:[%s399_s0 + $0x10] sm:$0x1]  }
   0x9   :  { %s273_s25 = smov 68   ;;  %s274_s26 = smov 64   ;;  %v213_v17 = vld [vmem:[%s399_s0 + $0xf] sm:$0x1]   ;;  %v214_v18 = vld [vmem:[%s399_s0 + $0xe] sm:$0x1]  }
   0xa   :  { %31 = vrot.lane.b32.xlu0 %v201_v4, %s263_s22  ;;  %37 = vrot.lane.b32.xlu1 %v202_v5, %s264_s23  ;;  %s275_s2 = smov 60   ;;  %s276_s3 = smov 56   ;;  %v215_v19 = vld [vmem:[%s399_s0 + $0xd] sm:$0x1]   ;;  %v216_v20 = vld [vmem:[%s399_s0 + $0xc] sm:$0x1]  }
   0xb   :  { %s278_s9 = smov 48   ;;  %v217_v21 = vld [vmem:[%s399_s0 + $0xb] sm:$0x1]   ;;  %v218_v22 = vld [vmem:[%s399_s0 + $0xa] sm:$0x1]   ;;  %s280_s15 = smov 40  }
   0xc   :  { %v219_v23 = vld [vmem:[%s399_s0 + $0x9] sm:$0x1]   ;;  %v220_v24 = vld [vmem:[%s399_s0 + $0x8] sm:$0x1]   ;;  %s282_s21 = smov 32   ;;  %s284_s27 = smov 24  }
   0xd   :  { %v221_v25 = vld [vmem:[%s399_s0 + $0x7] sm:$0x1]   ;;  %v222_v26 = vld [vmem:[%s399_s0 + $0x6] sm:$0x1]   ;;  %v223_v27 = vld [vmem:[%s399_s0 + $0x5] sm:$0x1]  }
   0xe   :  { %43 = vrot.lane.b32.xlu0 %v203_v6, %s265_s28  ;;  %49 = vrot.lane.b32.xlu1 %v204_v7, %s266_s29  ;;  %v224_v28 = vld [vmem:[%s399_s0 + $0x4] sm:$0x1]   ;;  %s286_s4 = smov 16   ;;  %v225_v29 = vld [vmem:[%s399_s0 + $0x3] sm:$0x1]   ;;  %s288_s10 = smov 8  }
   0xf   :  { %v226_v30 = vld [vmem:[%s399_s0 + $0x2] sm:$0x1]   ;;  %v227_v31 = vld [vmem:[%s399_s0 + $0x1] sm:$0x1]   ;;  %s289_s0 = smov 4   ;;  %vm27_vm4 = vcmask 950144  }
  0x10   :  { %vm33_vm5 = vcmask 917344   ;;  %vm39_vm6 = vcmask 884544   ;;  %vm45_vm7 = vcmask 851744   ;;  %vm51_vm8 = vcmask 818944  }
  0x11   :  { %vm57_vm9 = vcmask 786144   ;;  %vm63_vm10 = vcmask 753344   ;;  %vm69_vm11 = vcmask 720544   ;;  %vm75_vm12 = vcmask 687744  }
  0x12   :  { %55 = vrot.lane.b32.xlu0 %v205_v8, %s267_s7  ;;  %61 = vrot.lane.b32.xlu1 %v206_v9, %s268_s8  ;;  %s277_s8 = smov 52   ;;  %vm81_vm13 = vcmask 654944   ;;  %vm87_vm14 = vcmask 622144   ;;  %vm93_vm15 = vcmask 589344   ;;  %vm99_vm0 = vcmask 556544  }
  0x16   :  { %67 = vrot.lane.b32.xlu0 %v207_v11, %s269_s13  ;;  %73 = vrot.lane.b32.xlu1 %v208_v12, %s270_s14  ;;  %s279_s14 = smov 44  }
  0x1a   :  { %79 = vrot.lane.b32.xlu0 %v209_v13, %s271_s19  ;;  %85 = vrot.lane.b32.xlu1 %v210_v14, %s272_s20  ;;  %s281_s20 = smov 36  }
  0x1e   :  { %91 = vrot.lane.b32.xlu0 %v211_v15, %s273_s25  ;;  %97 = vrot.lane.b32.xlu1 %v212_v16, %s274_s26  ;;  %s283_s26 = smov 28  }
  0x22   :  { %103 = vrot.lane.b32.xlu0 %v213_v17, %s275_s2  ;;  %109 = vrot.lane.b32.xlu1 %v214_v18, %s276_s3  ;;  %s285_s3 = smov 20  }
  0x26   :  { %115 = vrot.lane.b32.xlu0 %v215_v19, %s277_s8  ;;  %121 = vrot.lane.b32.xlu1 %v216_v20, %s278_s9  ;;  %s287_s9 = smov 12  }
  0x2a   :  { %127 = vrot.lane.b32.xlu0 %v217_v21, %s279_s14  ;;  %133 = vrot.lane.b32.xlu1 %v218_v22, %s280_s15 }
  0x2e   :  { %139 = vrot.lane.b32.xlu0 %v219_v23, %s281_s20  ;;  %145 = vrot.lane.b32.xlu1 %v220_v24, %s282_s21 }
  0x32   :  { %151 = vrot.lane.b32.xlu0 %v221_v25, %s283_s26  ;;  %157 = vrot.lane.b32.xlu1 %v222_v26, %s284_s27 }
  0x36   :  { %163 = vrot.lane.b32.xlu0 %v223_v27, %s285_s3  ;;  %169 = vrot.lane.b32.xlu1 %v224_v28, %s286_s4 }
  0x3a   :  { %175 = vrot.lane.b32.xlu0 %v225_v29, %s287_s9  ;;  %181 = vrot.lane.b32.xlu1 %v226_v30, %s288_s10 }
  0x3e   :  { %187 = vrot.lane.b32.xlu0 %v227_v31, %s289_s0 }
  0x74   :  { %v8_v32 = vpop.permute.xlu0 %7   ;;  %v20_v33 = vpop.permute.xlu1 %19  }
  0x75   :  { %10 = vst.msk [vmem:[#allocation0] sm:$0x1] %vm9_vm1, %v8_v32   ;;  %vm105_vm1 = vcmask 523744  }
  0x78   :  { %v14_v34 = vpop.permute.xlu0 %13   ;;  %v26_v35 = vpop.permute.xlu1 %25  }
  0x79   :  { %16 = vst.msk [vmem:[#allocation0] sm:$0x1] %vm15_vm2, %v14_v34   ;;  %vm111_vm2 = vcmask 490944  }
  0x7a   :  { %22 = vst.msk [vmem:[#allocation0] sm:$0x1] %vm21_vm3, %v20_v33   ;;  %vm117_vm3 = vcmask 458144  }
  0x7b   :  { %28 = vst.msk [vmem:[#allocation0] sm:$0x1] %vm27_vm4, %v26_v35   ;;  %vm123_vm4 = vcmask 425344  }
  0x7c   :  { %v32_v36 = vpop.permute.xlu0 %31   ;;  %v38_v37 = vpop.permute.xlu1 %37  }
  0x7d   :  { %34 = vst.msk [vmem:[#allocation0] sm:$0x1] %vm33_vm5, %v32_v36   ;;  %vm129_vm5 = vcmask 392544  }
  0x7e   :  { %40 = vst.msk [vmem:[#allocation0] sm:$0x1] %vm39_vm6, %v38_v37   ;;  %vm135_vm6 = vcmask 359744  }
  0x80   :  { %v44_v38 = vpop.permute.xlu0 %43   ;;  %v50_v39 = vpop.permute.xlu1 %49  }
  0x81   :  { %46 = vst.msk [vmem:[#allocation0] sm:$0x1] %vm45_vm7, %v44_v38   ;;  %vm141_vm7 = vcmask 326944  }
  0x82   :  { %52 = vst.msk [vmem:[#allocation0] sm:$0x1] %vm51_vm8, %v50_v39   ;;  %vm147_vm8 = vcmask 294144  }
  0x84   :  { %v56_v40 = vpop.permute.xlu0 %55   ;;  %v62_v41 = vpop.permute.xlu1 %61  }
  0x85   :  { %58 = vst.msk [vmem:[#allocation0] sm:$0x1] %vm57_vm9, %v56_v40   ;;  %vm153_vm9 = vcmask 261344  }
  0x86   :  { %64 = vst.msk [vmem:[#allocation0] sm:$0x1] %vm63_vm10, %v62_v41   ;;  %vm159_vm10 = vcmask 228544  }
  0x88   :  { %v68_v42 = vpop.permute.xlu0 %67   ;;  %v74_v43 = vpop.permute.xlu1 %73  }
  0x89   :  { %70 = vst.msk [vmem:[#allocation0] sm:$0x1] %vm69_vm11, %v68_v42   ;;  %vm165_vm11 = vcmask 195744  }
  0x8a   :  { %76 = vst.msk [vmem:[#allocation0] sm:$0x1] %vm75_vm12, %v74_v43   ;;  %vm171_vm12 = vcmask 162944  }
  0x8c   :  { %v80_v44 = vpop.permute.xlu0 %79   ;;  %v86_v45 = vpop.permute.xlu1 %85  }
  0x8d   :  { %82 = vst.msk [vmem:[#allocation0] sm:$0x1] %vm81_vm13, %v80_v44   ;;  %vm177_vm13 = vcmask 130144  }
  0x8e   :  { %88 = vst.msk [vmem:[#allocation0] sm:$0x1] %vm87_vm14, %v86_v45   ;;  %vm183_vm14 = vcmask 97344  }
  0x90   :  { %v92_v46 = vpop.permute.xlu0 %91   ;;  %v98_v47 = vpop.permute.xlu1 %97  }
  0x91   :  { %94 = vst.msk [vmem:[#allocation0] sm:$0x1] %vm93_vm15, %v92_v46   ;;  %vm189_vm15 = vcmask 64544  }
  0x92   :  { %100 = vst.msk [vmem:[#allocation0] sm:$0x1] %vm99_vm0, %v98_v47  }
  0x94   :  { %v104_v48 = vpop.permute.xlu0 %103   ;;  %v110_v49 = vpop.permute.xlu1 %109  }
  0x95   :  { %106 = vst.msk [vmem:[#allocation0] sm:$0x1] %vm105_vm1, %v104_v48  }
  0x96   :  { %112 = vst.msk [vmem:[#allocation0] sm:$0x1] %vm111_vm2, %v110_v49  }
  0x98   :  { %v116_v50 = vpop.permute.xlu0 %115   ;;  %v122_v51 = vpop.permute.xlu1 %121  }
  0x99   :  { %118 = vst.msk [vmem:[#allocation0] sm:$0x1] %vm117_vm3, %v116_v50  }
  0x9a   :  { %124 = vst.msk [vmem:[#allocation0] sm:$0x1] %vm123_vm4, %v122_v51  }
  0x9c   :  { %v128_v52 = vpop.permute.xlu0 %127   ;;  %v134_v53 = vpop.permute.xlu1 %133  }
  0x9d   :  { %130 = vst.msk [vmem:[#allocation0] sm:$0x1] %vm129_vm5, %v128_v52  }
  0x9e   :  { %136 = vst.msk [vmem:[#allocation0] sm:$0x1] %vm135_vm6, %v134_v53  }
  0xa0   :  { %v140_v54 = vpop.permute.xlu0 %139   ;;  %v146_v55 = vpop.permute.xlu1 %145  }
  0xa1   :  { %142 = vst.msk [vmem:[#allocation0] sm:$0x1] %vm141_vm7, %v140_v54  }
  0xa2   :  { %148 = vst.msk [vmem:[#allocation0] sm:$0x1] %vm147_vm8, %v146_v55  }
  0xa4   :  { %v152_v56 = vpop.permute.xlu0 %151   ;;  %v158_v57 = vpop.permute.xlu1 %157  }
  0xa5   :  { %154 = vst.msk [vmem:[#allocation0] sm:$0x1] %vm153_vm9, %v152_v56  }
  0xa6   :  { %160 = vst.msk [vmem:[#allocation0] sm:$0x1] %vm159_vm10, %v158_v57  }
  0xa8   :  { %v164_v58 = vpop.permute.xlu0 %163   ;;  %v170_v59 = vpop.permute.xlu1 %169  }
  0xa9   :  { %166 = vst.msk [vmem:[#allocation0] sm:$0x1] %vm165_vm11, %v164_v58  }
  0xaa   :  { %172 = vst.msk [vmem:[#allocation0] sm:$0x1] %vm171_vm12, %v170_v59  }
  0xac   :  { %v176_v60 = vpop.permute.xlu0 %175   ;;  %v182_v61 = vpop.permute.xlu1 %181  }
  0xad   :  { %178 = vst.msk [vmem:[#allocation0] sm:$0x1] %vm177_vm13, %v176_v60  }
  0xae   :  { %184 = vst.msk [vmem:[#allocation0] sm:$0x1] %vm183_vm14, %v182_v61  }
  0xb0   :  { %v188_v62 = vpop.permute.xlu0 %187  }
  0xb1   :  { %190 = vst.msk [vmem:[#allocation0] sm:$0x1] %vm189_vm15, %v188_v62  }
  0xb8   :  { %v194_v63 = vld [vmem:[#allocation0] sm:$0x1] }
  0xb9   :  { %196 = vst [vmem:[%s400_s1] sm:$0x1] %v194_v63 }

// kernel: tile.13
= control target key start
LH: loop header
LB: loop body
LE: loop exit
PB: predicated region body
PF: predicated region fallthrough
CT: control target
= control target key end

     0   :  { %s40_s0 = inlined_call_operand.vmem [shape: f32[4], index: 0, kind: input, shape index: {}]   ;;  %s41_s1 = inlined_call_operand.vmem [shape: f32[32,4], index: 1, kind: output, shape index: {}]  }
   0x1   :  { %v4_v0 = vld [vmem:[%s40_s0] ss:$0 sm:$0xff] }
   0x2   :  { %5 = vst [vmem:[%s41_s1] sm:$0xff] %v4_v0  ;;  %12 = vst [vmem:[%s41_s1 + $0x8] sm:$0xff] %v4_v0 }
   0x3   :  { %13 = vst [vmem:[%s41_s1 + $0x10] sm:$0xff] %v4_v0  ;;  %14 = vst [vmem:[%s41_s1 + $0x18] sm:$0xff] %v4_v0 }

// kernel: resblock_forward.1
= control target key start
LH: loop header
LB: loop body
LE: loop exit
PB: predicated region body
PF: predicated region fallthrough
CT: control target
= control target key end

     0   :  { %s1419_s18 = smov 0   ;;  %s1806_s0 = inlined_call_operand.vmem [shape: f32[2,8,128], index: 0, kind: input, shape index: {}]   ;;  %s1807_s1 = inlined_call_operand.vmem [shape: f32[3,128,128], index: 1, kind: input, shape index: {}]   ;;  %s1808_s2 = inlined_call_operand.vmem [shape: f32[1,128], index: 2, kind: input, shape index: {}]   ;;  %s1809_s3 = inlined_call_operand.vmem [shape: f32[3,128,128], index: 3, kind: input, shape index: {}]   ;;  %s1810_s4 = inlined_call_operand.vmem [shape: f32[1,128], index: 4, kind: input, shape index: {}]   ;;  %s1811_s5 = inlined_call_operand.vmem [shape: f32[2,8,128], index: 5, kind: output, shape index: {}]  }
   0x1 LB: > { %s831_s19 = sadd.s32 4294967295, %s1384_s18   ;;  %p835_p0 = scmp.ge.s32.totalorder %s1384_s18, 1  ;;  %s1384_s18 = sphi %s1419_s18, %s15_s18  }
   0x2   : > { %p186_p1 = scmp.lt.s32.totalorder %s1384_s18, 3 }
   0x4   : > { %p187_p2 = pnand %p835_p0, %p186_p1 }
   0x5   : > { %v838_v0 = vld [vmem:[%s1807_s1 + $0x80] sm:$0xff] (!%p187_p2)  ;;  %v839_v1 = vld [vmem:[%s1807_s1 + $0x88] sm:$0xff] (!%p187_p2)  ;;  %v840_v2 = vld [vmem:[%s1807_s1 + $0x90] sm:$0xff] (!%p187_p2)  ;;  %v1386_v3 = vmov (!%p187_p2), 0.0|0.0   ;;  %vm1387_vm0 = vmmov (!%p187_p2), 0   ;;  %v1388_v6 = vmov (!%p187_p2), 0.0  }
   0x6   : > { %190 = sbr.rel (%p187_p2) target bundleno = 609 (0x261), region = 40  ;;  %1218 = vmatprep.subr.bf16.mxu0 (!%p187_p2), %v1386_v3  ;;  %v1219_v4 = vpack.c.bf16 (!%p187_p2), %v839_v1, %v838_v0  ;;  %v841_v5 = vld [vmem:[%s1807_s1 + $0x98] sm:$0xff] (!%p187_p2)  ;;  %1040 = vmatprep.mubr.msk.f32.mxu0 (!%p187_p2), %vm1387_vm0, %v1388_v6  ;;  %220 = vst [vmem:[#allocation2] sm:$0x1] (!%p187_p2), %v1388_v6  ;;  %221 = vst [vmem:[#allocation2 + $0x9] sm:$0x1] (!%p187_p2), %v1388_v6 }
   0x7   : > { %222 = vst [vmem:[#allocation3] sm:$0x1] (!%p187_p2), %v1388_v6  ;;  %223 = vst [vmem:[#allocation3 + $0x9] sm:$0x1] (!%p187_p2), %v1388_v6  ;;  %p212_p3 = scmp.lt.s32.totalorder (!%p187_p2), %s831_s19, 1  ;;  %1290 = vmatprep.subr.bf16.mxu1 (!%p187_p2), %v1386_v3  ;;  %1145 = vmatprep.mubr.msk.f32.mxu1 (!%p187_p2), %vm1387_vm0, %v1388_v6  ;;  %v1222_v7 = vpack.c.bf16 (!%p187_p2), %v841_v5, %v840_v2  ;;  %v842_v8 = vld [vmem:[%s1807_s1 + $0xa0] sm:$0xff] (!%p187_p2) }
   0x8   : > { %1220 = vmatpush3.bf16.msra.mxu0 (!%p187_p2), %v1219_v4  ;;  %v843_v9 = vld [vmem:[%s1807_s1 + $0xa8] sm:$0xff] (!%p187_p2)  ;;  %v844_v12 = vld [vmem:[%s1807_s1 + $0xb0] sm:$0xff] (!%p187_p2)  ;;  %v845_v13 = vld [vmem:[%s1807_s1 + $0xb8] sm:$0xff] (!%p187_p2) }
   0x9   : > { %1221 = vmatprep.subr.bf16.mxu0 (!%p187_p2), %v1386_v3  ;;  %v1225_v10 = vpack.c.bf16 (!%p187_p2), %v843_v9, %v842_v8  ;;  %v1228_v14 = vpack.c.bf16 (!%p187_p2), %v845_v13, %v844_v12  ;;  %v846_v15 = vld [vmem:[%s1807_s1 + $0xc0] sm:$0xff] (!%p187_p2)  ;;  %v847_v16 = vld [vmem:[%s1807_s1 + $0xc8] sm:$0xff] (!%p187_p2)  ;;  %v848_v18 = vld [vmem:[%s1807_s1 + $0xd0] sm:$0xff] (!%p187_p2) }
   0xa   : > { %v1231_v17 = vpack.c.bf16 (!%p187_p2), %v847_v16, %v846_v15  ;;  %v849_v19 = vld [vmem:[%s1807_s1 + $0xd8] sm:$0xff] (!%p187_p2)  ;;  %v850_v21 = vld [vmem:[%s1807_s1 + $0xe0] sm:$0xff] (!%p187_p2)  ;;  %v851_v22 = vld [vmem:[%s1807_s1 + $0xe8] sm:$0xff] (!%p187_p2) }
   0xb   : > { %v1234_v20 = vpack.c.bf16 (!%p187_p2), %v849_v19, %v848_v18  ;;  %v1237_v23 = vpack.c.bf16 (!%p187_p2), %v851_v22, %v850_v21  ;;  %v852_v24 = vld [vmem:[%s1807_s1 + $0xf0] sm:$0xff] (!%p187_p2)  ;;  %v853_v25 = vld [vmem:[%s1807_s1 + $0xf8] sm:$0xff] (!%p187_p2)  ;;  %v227_v27 = vld [vmem:[%s1807_s1] sm:$0xff] (!%p187_p2) }
   0xc   : > { %1223 = vmatpush3.bf16.msra.mxu0 (!%p187_p2), %v1222_v7  ;;  %v1240_v26 = vpack.c.bf16 (!%p187_p2), %v853_v25, %v852_v24  ;;  %v228_v28 = vld [vmem:[%s1807_s1 + $0x8] sm:$0xff] (!%p187_p2)  ;;  %v229_v30 = vld [vmem:[%s1807_s1 + $0x10] sm:$0xff] (!%p187_p2)  ;;  %v230_v31 = vld [vmem:[%s1807_s1 + $0x18] sm:$0xff] (!%p187_p2) }
   0xd   : > { %s1813_s19 = smov (!%p212_p3, %s831_s19), 1  ;;  %1224 = vmatprep.subr.bf16.mxu0 %v1386_v3  ;;  %v1243_v29 = vpack.c.bf16 %v228_v28, %v227_v27  ;;  %v1246_v32 = vpack.c.bf16 %v230_v31, %v229_v30  ;;  %v231_v33 = vld [vmem:[%s1807_s1 + $0x20] sm:$0xff]  ;;  %v232_v34 = vld [vmem:[%s1807_s1 + $0x28] sm:$0xff]  ;;  %v233_v36 = vld [vmem:[%s1807_s1 + $0x30] sm:$0xff] }
   0xe   : > { %s836_s7 = sshll.u32 %s1813_s19, 3  ;;  %v1249_v35 = vpack.c.bf16 %v232_v34, %v231_v33  ;;  %v234_v37 = vld [vmem:[%s1807_s1 + $0x38] sm:$0xff]  ;;  %v235_v39 = vld [vmem:[%s1807_s1 + $0x40] sm:$0xff]  ;;  %v236_v40 = vld [vmem:[%s1807_s1 + $0x48] sm:$0xff] }
   0xf   : > { %s215_s10 = scalar_lea.vmem %s1806_s0, %s836_s7  ;;  %v1252_v38 = vpack.c.bf16 %v234_v37, %v233_v36  ;;  %v1255_v41 = vpack.c.bf16 %v236_v40, %v235_v39  ;;  %v237_v42 = vld [vmem:[%s1807_s1 + $0x50] sm:$0xff]  ;;  %v238_v43 = vld [vmem:[%s1807_s1 + $0x58] sm:$0xff]  ;;  %v239_v45 = vld [vmem:[%s1807_s1 + $0x60] sm:$0xff]  ;;  %s219_s23 = scalar_lea.vmem %s1811_s5, %s836_s7 }
  0x10   : > { %v1464_v11 = vld [vmem:[%s215_s10] sm:$0xff]  ;;  %1226 = vmatpush3.bf16.msra.mxu0 %v1225_v10  ;;  %v1258_v44 = vpack.c.bf16 %v238_v43, %v237_v42  ;;  %v240_v46 = vld [vmem:[%s1807_s1 + $0x68] sm:$0xff]  ;;  %v241_v48 = vld [vmem:[%s1807_s1 + $0x70] sm:$0xff] }
  0x11   : > { %225 = vst [vmem:[#allocation2 + $0x1] sm:$0xff] %v1464_v11  ;;  %1227 = vmatprep.subr.bf16.mxu0 %v1386_v3  ;;  %v1261_v47 = vpack.c.bf16 %v240_v46, %v239_v45  ;;  %v242_v49 = vld [vmem:[%s1807_s1 + $0x78] sm:$0xff]  ;;  %v854_v51 = vld [vmem:[%s1807_s1 + $0x100] sm:$0xff]  ;;  %v855_v52 = vld [vmem:[%s1807_s1 + $0x108] sm:$0xff] }
  0x12   : > { %v1264_v50 = vpack.c.bf16 %v242_v49, %v241_v48  ;;  %v1267_v54 = vpack.c.bf16 %v855_v52, %v854_v51  ;;  %v856_v55 = vld [vmem:[%s1807_s1 + $0x110] sm:$0xff]  ;;  %v857_v56 = vld [vmem:[%s1807_s1 + $0x118] sm:$0xff]  ;;  %v858_v58 = vld [vmem:[%s1807_s1 + $0x120] sm:$0xff] }
  0x13   : > { %v1270_v57 = vpack.c.bf16 %v857_v56, %v856_v55  ;;  %v859_v59 = vld [vmem:[%s1807_s1 + $0x128] sm:$0xff]  ;;  %v860_v61 = vld [vmem:[%s1807_s1 + $0x130] sm:$0xff]  ;;  %v861_v62 = vld [vmem:[%s1807_s1 + $0x138] sm:$0xff] }
  0x14   : > { %1229 = vmatpush3.bf16.msra.mxu0 %v1228_v14  ;;  %v1273_v60 = vpack.c.bf16 %v859_v59, %v858_v58  ;;  %v1276_v63 = vpack.c.bf16 %v861_v62, %v860_v61  ;;  %v862_v0 = vld [vmem:[%s1807_s1 + $0x140] sm:$0xff]  ;;  %v863_v1 = vld [vmem:[%s1807_s1 + $0x148] sm:$0xff]  ;;  %v864_v4 = vld [vmem:[%s1807_s1 + $0x150] sm:$0xff] }
  0x15   : > { %1230 = vmatprep.subr.bf16.mxu0 %v1386_v3  ;;  %v1279_v2 = vpack.c.bf16 %v863_v1, %v862_v0  ;;  %v865_v5 = vld [vmem:[%s1807_s1 + $0x158] sm:$0xff]  ;;  %v866_v8 = vld [vmem:[%s1807_s1 + $0x160] sm:$0xff]  ;;  %v867_v9 = vld [vmem:[%s1807_s1 + $0x168] sm:$0xff] }
  0x16   : > { %v1282_v7 = vpack.c.bf16 %v865_v5, %v864_v4  ;;  %v1285_v10 = vpack.c.bf16 %v867_v9, %v866_v8  ;;  %v868_v12 = vld [vmem:[%s1807_s1 + $0x170] sm:$0xff]  ;;  %v869_v13 = vld [vmem:[%s1807_s1 + $0x178] sm:$0xff]  ;;  %v512_v16 = vld [vmem:[%s1809_s3] sm:$0xff] }
  0x17   : > { %v1288_v14 = vpack.c.bf16 %v869_v13, %v868_v12  ;;  %v514_v18 = vld [vmem:[%s1809_s3 + $0x10] sm:$0xff]  ;;  %v516_v22 = vld [vmem:[%s1809_s3 + $0x20] sm:$0xff]  ;;  %v875_v56 = vld [vmem:[%s1809_s3 + $0x98] sm:$0xff] }
  0x18   : > { %1232 = vmatpush3.bf16.msra.mxu0 %v1231_v17  ;;  %v226_v53 = vld [vmem:[#allocation2] sm:$0xff]  ;;  %v513_v17 = vld [vmem:[%s1809_s3 + $0x8] sm:$0xff]  ;;  %v518_v25 = vld [vmem:[%s1809_s3 + $0x30] sm:$0xff] }
  0x19   : > { %1233 = vmatprep.subr.bf16.mxu0 %v1386_v3  ;;  %v401_v15 = vld [vmem:[#allocation2 + $0x2] sm:$0xff]  ;;  %v1291_v19 = vpack.c.bf16 %v513_v17, %v512_v16  ;;  %v522_v31 = vld [vmem:[%s1809_s3 + $0x50] sm:$0xff]  ;;  %v870_v46 = vld [vmem:[%s1808_s2] ss:$0 sm:$0xff] }
  0x1a   : > { %v520_v28 = vld [vmem:[%s1809_s3 + $0x40] sm:$0xff]  ;;  %v526_v37 = vld [vmem:[%s1809_s3 + $0x70] sm:$0xff]  ;;  %v889_v17 = vld [vmem:[%s1809_s3 + $0x108] sm:$0xff] }
  0x1b   : > { %1292 = vmatpush3.bf16.msra.mxu1 %v1291_v19  ;;  %v524_v34 = vld [vmem:[%s1809_s3 + $0x60] sm:$0xff]  ;;  %v874_v55 = vld [vmem:[%s1809_s3 + $0x90] sm:$0xff] }
  0x1c   : > { %1235 = vmatpush3.bf16.msra.mxu0 %v1234_v20  ;;  %v515_v20 = vld [vmem:[%s1809_s3 + $0x18] sm:$0xff]  ;;  %1293 = vmatprep.subr.bf16.mxu1 %v1386_v3  ;;  %v872_v52 = vld [vmem:[%s1809_s3 + $0x80] sm:$0xff]  ;;  %v1318_v58 = vpack.c.bf16 %v875_v56, %v874_v55  ;;  %v878_v62 = vld [vmem:[%s1809_s3 + $0xb0] sm:$0xff] }
  0x1d   : > { %1236 = vmatprep.subr.bf16.mxu0 %v1386_v3  ;;  %v1294_v21 = vpack.c.bf16 %v515_v20, %v514_v18  ;;  %v876_v59 = vld [vmem:[%s1809_s3 + $0xa0] sm:$0xff]  ;;  %v882_v5 = vld [vmem:[%s1809_s3 + $0xd0] sm:$0xff]  ;;  %v891_v20 = vld [vmem:[%s1809_s3 + $0x118] sm:$0xff] }
  0x1e   : > { %v880_v1 = vld [vmem:[%s1809_s3 + $0xc0] sm:$0xff]  ;;  %v886_v13 = vld [vmem:[%s1809_s3 + $0xf0] sm:$0xff] }
  0x1f   : > { %1295 = vmatpush3.bf16.msra.mxu1 %v1294_v21  ;;  %v884_v9 = vld [vmem:[%s1809_s3 + $0xe0] sm:$0xff]  ;;  %v890_v19 = vld [vmem:[%s1809_s3 + $0x110] sm:$0xff] }
  0x20   : > { %1238 = vmatpush3.bf16.msra.mxu0 %v1237_v23  ;;  %v517_v23 = vld [vmem:[%s1809_s3 + $0x28] sm:$0xff]  ;;  %1296 = vmatprep.subr.bf16.mxu1 %v1386_v3  ;;  %v888_v16 = vld [vmem:[%s1809_s3 + $0x100] sm:$0xff]  ;;  %v1342_v21 = vpack.c.bf16 %v891_v20, %v890_v19 }
  0x21   : > { %1239 = vmatprep.subr.bf16.mxu0 %v1386_v3  ;;  %v1297_v24 = vpack.c.bf16 %v517_v23, %v516_v22  ;;  %v1339_v18 = vpack.c.bf16 %v889_v17, %v888_v16  ;;  %v892_v22 = vld [vmem:[%s1809_s3 + $0x120] sm:$0xff]  ;;  %v893_v23 = vld [vmem:[%s1809_s3 + $0x128] sm:$0xff] }
  0x23   : > { %1298 = vmatpush3.bf16.msra.mxu1 %v1297_v24  ;;  %v1345_v24 = vpack.c.bf16 %v893_v23, %v892_v22 }
  0x24   : > { %1241 = vmatpush3.bf16.msra.mxu0 %v1240_v26  ;;  %v519_v26 = vld [vmem:[%s1809_s3 + $0x38] sm:$0xff]  ;;  %1299 = vmatprep.subr.bf16.mxu1 %v1386_v3 }
  0x25   : > { %1242 = vmatprep.subr.bf16.mxu0 %v1386_v3  ;;  %v1300_v27 = vpack.c.bf16 %v519_v26, %v518_v25  ;;  %v894_v25 = vld [vmem:[%s1809_s3 + $0x130] sm:$0xff] }
  0x27   : > { %1041 = vmatmul.mubr.f32.vlgmr.msra.gmra.mrb[0].mxu0 %v1464_v11  ;;  %1301 = vmatpush3.bf16.msra.mxu1 %v1300_v27  ;;  %v896_v27 = vld [vmem:[%s1809_s3 + $0x140] sm:$0xff] }
  0x28   : > { %1244 = vmatpush3.bf16.msra.mxu0 %v1243_v29  ;;  %1075 = vmatprep.mubr.msk.f32.mxu0 %vm1387_vm0, %v1388_v6  ;;  %v521_v29 = vld [vmem:[%s1809_s3 + $0x48] sm:$0xff] }
  0x29   : > { %1245 = vmatprep.subr.bf16.mxu0 %v1386_v3  ;;  %1302 = vmatprep.subr.bf16.mxu1 %v1386_v3  ;;  %v1303_v30 = vpack.c.bf16 %v521_v29, %v520_v28  ;;  %v897_v28 = vld [vmem:[%s1809_s3 + $0x148] sm:$0xff] }
  0x2a   : > { %v1351_v29 = vpack.c.bf16 %v897_v28, %v896_v27 }
  0x2b   : > { %1304 = vmatpush3.bf16.msra.mxu1 %v1303_v30  ;;  %v898_v30 = vld [vmem:[%s1809_s3 + $0x150] sm:$0xff] }
  0x2c   : > { %1247 = vmatpush3.bf16.msra.mxu0 %v1246_v32  ;;  %1305 = vmatprep.subr.bf16.mxu1 %v1386_v3  ;;  %v523_v32 = vld [vmem:[%s1809_s3 + $0x58] sm:$0xff] }
  0x2d   : > { %1248 = vmatprep.subr.bf16.mxu0 %v1386_v3  ;;  %v1306_v33 = vpack.c.bf16 %v523_v32, %v522_v31  ;;  %v899_v31 = vld [vmem:[%s1809_s3 + $0x158] sm:$0xff] }
  0x2e   : > { %v1354_v32 = vpack.c.bf16 %v899_v31, %v898_v30 }
  0x2f   : > { %1307 = vmatpush3.bf16.msra.mxu1 %v1306_v33  ;;  %v900_v33 = vld [vmem:[%s1809_s3 + $0x160] sm:$0xff] }
  0x30   : > { %1250 = vmatpush3.bf16.msra.mxu0 %v1249_v35  ;;  %1308 = vmatprep.subr.bf16.mxu1 %v1386_v3  ;;  %v525_v35 = vld [vmem:[%s1809_s3 + $0x68] sm:$0xff] }
  0x31   : > { %1251 = vmatprep.subr.bf16.mxu0 %v1386_v3  ;;  %v1309_v36 = vpack.c.bf16 %v525_v35, %v524_v34  ;;  %v901_v34 = vld [vmem:[%s1809_s3 + $0x168] sm:$0xff] }
  0x32   : > { %v1357_v35 = vpack.c.bf16 %v901_v34, %v900_v33 }
  0x33   : > { %1310 = vmatpush3.bf16.msra.mxu1 %v1309_v36  ;;  %v902_v36 = vld [vmem:[%s1809_s3 + $0x170] sm:$0xff] }
  0x34   : > { %1253 = vmatpush3.bf16.msra.mxu0 %v1252_v38  ;;  %v527_v38 = vld [vmem:[%s1809_s3 + $0x78] sm:$0xff]  ;;  %1311 = vmatprep.subr.bf16.mxu1 %v1386_v3 }
  0x35   : > { %1254 = vmatprep.subr.bf16.mxu0 %v1386_v3  ;;  %v1312_v39 = vpack.c.bf16 %v527_v38, %v526_v37  ;;  %v903_v37 = vld [vmem:[%s1809_s3 + $0x178] sm:$0xff] }
  0x36   : > { %v1360_v38 = vpack.c.bf16 %v903_v37, %v902_v36 }
  0x37   : > { %1313 = vmatpush3.bf16.msra.mxu1 %v1312_v39 }
  0x38   : > { %1256 = vmatpush3.bf16.msra.mxu0 %v1255_v41  ;;  %1314 = vmatprep.subr.bf16.mxu1 %v1386_v3 }
  0x39   : > { %1257 = vmatprep.subr.bf16.mxu0 %v1386_v3 }
  0x3c   : > { %1259 = vmatpush3.bf16.msra.mxu0 %v1258_v44 }
  0x3d   : > { %1260 = vmatprep.subr.bf16.mxu0 %v1386_v3 }
  0x40   : > { %1262 = vmatpush3.bf16.msra.mxu0 %v1261_v47 }
  0x41   : > { %1263 = vmatprep.subr.bf16.mxu0 %v1386_v3 }
  0x44   : > { %1265 = vmatpush3.bf16.msra.mxu0 %v1264_v50 }
  0x45   : > { %1266 = vmatprep.subr.bf16.mxu0 %v1386_v3 }
  0x47   : > { %1076 = vmatmul.mubr.f32.vlgmr.msra.gmra.mrb[2].mxu0 %v226_v53  ;;  %v873_v53 = vld [vmem:[%s1809_s3 + $0x88] sm:$0xff] }
  0x48   : > { %1268 = vmatpush3.bf16.msra.mxu0 %v1267_v54  ;;  %1110 = vmatprep.mubr.msk.f32.mxu0 %vm1387_vm0, %v1388_v6  ;;  %v1315_v54 = vpack.c.bf16 %v873_v53, %v872_v52 }
  0x49   : > { %1269 = vmatprep.subr.bf16.mxu0 %v1386_v3 }
  0x4c   : > { %1271 = vmatpush3.bf16.msra.mxu0 %v1270_v57 }
  0x4d   : > { %1272 = vmatprep.subr.bf16.mxu0 %v1386_v3 }
  0x50   : > { %1274 = vmatpush3.bf16.msra.mxu0 %v1273_v60  ;;  %v877_v60 = vld [vmem:[%s1809_s3 + $0xa8] sm:$0xff] }
  0x51   : > { %1275 = vmatprep.subr.bf16.mxu0 %v1386_v3  ;;  %v1321_v61 = vpack.c.bf16 %v877_v60, %v876_v59 }
  0x54   : > { %1277 = vmatpush3.bf16.msra.mxu0 %v1276_v63  ;;  %v879_v63 = vld [vmem:[%s1809_s3 + $0xb8] sm:$0xff] }
  0x55   : > { %1278 = vmatprep.subr.bf16.mxu0 %v1386_v3  ;;  %v1324_v0 = vpack.c.bf16 %v879_v63, %v878_v62 }
  0x58   : > { %1280 = vmatpush3.bf16.msra.mxu0 %v1279_v2  ;;  %v881_v2 = vld [vmem:[%s1809_s3 + $0xc8] sm:$0xff] }
  0x59   : > { %1281 = vmatprep.subr.bf16.mxu0 %v1386_v3  ;;  %v1327_v4 = vpack.c.bf16 %v881_v2, %v880_v1 }
  0x5c   : > { %1283 = vmatpush3.bf16.msra.mxu0 %v1282_v7  ;;  %v883_v7 = vld [vmem:[%s1809_s3 + $0xd8] sm:$0xff] }
  0x5d   : > { %1284 = vmatprep.subr.bf16.mxu0 %v1386_v3  ;;  %v1330_v8 = vpack.c.bf16 %v883_v7, %v882_v5 }
  0x60   : > { %1286 = vmatpush3.bf16.msra.mxu0 %v1285_v10  ;;  %v885_v10 = vld [vmem:[%s1809_s3 + $0xe8] sm:$0xff] }
  0x61   : > { %1287 = vmatprep.subr.bf16.mxu0 %v1386_v3  ;;  %v1333_v12 = vpack.c.bf16 %v885_v10, %v884_v9 }
  0x64   : > { %1289 = vmatpush3.bf16.msra.mxu0 %v1288_v14  ;;  %v887_v14 = vld [vmem:[%s1809_s3 + $0xf8] sm:$0xff] }
  0x67   : > { %1111 = vmatmul.mubr.f32.vlgmr.msra.gmra.mrb[4].mxu0 %v401_v15  ;;  %v1336_v15 = vpack.c.bf16 %v887_v14, %v886_v13 }
  0xfa   : > { %v327_v40 = vpop.f32.mrb[0].mxu0 }
  0xfb   : > { %v1042_v41 = vpop.f32.mrb[1].mxu0 }
 0x11a   : > { %v397_v42 = vpop.f32.mrb[2].mxu0 }
 0x11b   : > { %v398_v43 = vadd.f32 %v397_v42, %v327_v40  ;;  %v1077_v44 = vpop.f32.mrb[3].mxu0  ;;  %v871_v40 = vld [vmem:[%s1810_s4] ss:$0 sm:$0xff] }
 0x11c   : > { %v510_v41 = vadd.f32 %v871_v40, %v1464_v11 }
 0x13a   : > { %v485_v45 = vpop.f32.mrb[4].mxu0 }
 0x13b   : > { %v489_v47 = vadd.f32 %v485_v45, %v398_v43  ;;  %v1112_v48 = vpop.f32.mrb[5].mxu0 }
 0x13d   : > { %v497_v49 = vadd.f32 %v870_v46, %v489_v47 }
 0x13f   : > { %vm498_vm1 = vcmp.gt.f32.partialorder %v497_v49, 0.0  ;;  %v499_v50 = vmul.f32 0.01, %v497_v49 }
 0x141   : > { %v500_v51 = vsel %vm498_vm1, %v497_v49, %v499_v50 }
 0x142   : > { %501 = vst [vmem:[#allocation3 + $0x1] sm:$0xff] %v500_v51 }
 0x149   : > { %v511_v57 = vld [vmem:[#allocation3] sm:$0xff] }
 0x14a   : > { %1146 = vmatmul.mubr.f32.vlgmr.msra.gmra.mrb[0].mxu1 %v511_v57  ;;  %v688_v39 = vld [vmem:[#allocation3 + $0x2] sm:$0xff] }
 0x14b   : > { %1316 = vmatpush3.bf16.msra.mxu1 %v1315_v54  ;;  %1180 = vmatprep.mubr.msk.f32.mxu1 %vm1387_vm0, %v1388_v6 }
 0x14c   : > { %1317 = vmatprep.subr.bf16.mxu1 %v1386_v3 }
 0x14f   : > { %1319 = vmatpush3.bf16.msra.mxu1 %v1318_v58 }
 0x150   : > { %1320 = vmatprep.subr.bf16.mxu1 %v1386_v3 }
 0x153   : > { %1322 = vmatpush3.bf16.msra.mxu1 %v1321_v61 }
 0x154   : > { %1323 = vmatprep.subr.bf16.mxu1 %v1386_v3 }
 0x157   : > { %1325 = vmatpush3.bf16.msra.mxu1 %v1324_v0 }
 0x158   : > { %1326 = vmatprep.subr.bf16.mxu1 %v1386_v3 }
 0x15b   : > { %1328 = vmatpush3.bf16.msra.mxu1 %v1327_v4 }
 0x15c   : > { %1329 = vmatprep.subr.bf16.mxu1 %v1386_v3 }
 0x15f   : > { %1331 = vmatpush3.bf16.msra.mxu1 %v1330_v8 }
 0x160   : > { %1332 = vmatprep.subr.bf16.mxu1 %v1386_v3 }
 0x163   : > { %1334 = vmatpush3.bf16.msra.mxu1 %v1333_v12 }
 0x164   : > { %1335 = vmatprep.subr.bf16.mxu1 %v1386_v3 }
 0x167   : > { %1337 = vmatpush3.bf16.msra.mxu1 %v1336_v15 }
 0x168   : > { %1338 = vmatprep.subr.bf16.mxu1 %v1386_v3 }
 0x16a   : > { %1181 = vmatmul.mubr.f32.vlgmr.msra.gmra.mrb[0].mxu1 %v500_v51 }
 0x16b   : > { %1340 = vmatpush3.bf16.msra.mxu1 %v1339_v18  ;;  %1215 = vmatprep.mubr.msk.f32.mxu1 %vm1387_vm0, %v1388_v6  ;;  %v895_v6 = vld [vmem:[%s1809_s3 + $0x138] sm:$0xff] }
 0x16c   : > { %1341 = vmatprep.subr.bf16.mxu1 %v1386_v3  ;;  %v1348_v26 = vpack.c.bf16 %v895_v6, %v894_v25 }
 0x16f   : > { %1343 = vmatpush3.bf16.msra.mxu1 %v1342_v21 }
 0x170   : > { %1344 = vmatprep.subr.bf16.mxu1 %v1386_v3 }
 0x173   : > { %1346 = vmatpush3.bf16.msra.mxu1 %v1345_v24 }
 0x174   : > { %1347 = vmatprep.subr.bf16.mxu1 %v1386_v3 }
 0x177   : > { %1349 = vmatpush3.bf16.msra.mxu1 %v1348_v26 }
 0x178   : > { %1350 = vmatprep.subr.bf16.mxu1 %v1386_v3 }
 0x17b   : > { %1352 = vmatpush3.bf16.msra.mxu1 %v1351_v29 }
 0x17c   : > { %1353 = vmatprep.subr.bf16.mxu1 %v1386_v3 }
 0x17f   : > { %1355 = vmatpush3.bf16.msra.mxu1 %v1354_v32 }
 0x180   : > { %1356 = vmatprep.subr.bf16.mxu1 %v1386_v3 }
 0x183   : > { %1358 = vmatpush3.bf16.msra.mxu1 %v1357_v35 }
 0x184   : > { %1359 = vmatprep.subr.bf16.mxu1 %v1386_v3 }
 0x187   : > { %1361 = vmatpush3.bf16.msra.mxu1 %v1360_v38 }
 0x18a   : > { %1216 = vmatmul.mubr.f32.vlgmr.msra.gmra.mrb[0].mxu1 %v688_v39 }
 0x25d   : > { %v772_v42 = vpop.f32.mrb[0].mxu1 }
 0x25e   : > { %v1362_v43 = vadd.f32 %v772_v42, %v510_v41  ;;  %v1217_v44 = vpop.f32.mrb[1].mxu1 }
 0x260   : > { %777 = vst [vmem:[%s219_s23] sm:$0xff] %v1362_v43 }
 0x261 PF: > { %s15_s18 = sadd.s32 1, %s1384_s18  }
 0x262   : > { %p12_p4 = scmp.ge.s32.totalorder %s15_s18, 4  }
 0x264   :  { %14 = sbr.rel (!%p12_p4) target bundleno = 1 (0x1), region = 74 }

</bundles_post_ra>
